<compile_context>
chip_gen: v6e
topology: v6e:2x2x1
jax: 0.10.0
libtpu: 0.0.40
codegen_flags: <defaults>
</compile_context>

<pallas_src>
import math

import jax
import jax.numpy as jnp
import numpy as np
from jax.experimental import pallas as pl
from jax.experimental.pallas import tpu as pltpu

C_OUT = 32          # hard-coded by the module's `reshape(N, u, h, 32, v, w)`
KSIZE = 3           # kernel_size=3, stride=1, padding=1 (same-spatial required)


def _choose_images_per_block(n_img, img_cols):
    """Whole conv-images per grid step (block columns = images * img_cols)."""
    cap_cols, target_cols, split_min_cols = 16384, 8192, 4096
    # Smallest whole-image group whose column count is a multiple of 512 (full MXU
    # lane groups / unmasked stores on v6e+); fall back to a 128-aligned group if a
    # single 512-aligned group alone would already exceed the cap.
    g512 = 512 // math.gcd(img_cols, 512)
    g128 = 128 // math.gcd(img_cols, 128)
    group = g512 if g512 * img_cols <= cap_cols else g128
    # Big-tile default: as many aligned groups as fit under the target width.
    bt = max(1, target_cols // (group * img_cols)) * group
    if bt >= n_img:
        if n_img * img_cols > split_min_cols and n_img >= 2 * group:
            # One step would hold everything: split into two still-large steps so a
            # second TensorCore (v7x) has work.  Harmless on single-TC chips.
            bt = pl.cdiv(pl.cdiv(n_img, 2), group) * group
        else:
            # Single full-array block (layout-exempt); don't shrink small problems.
            bt = n_img
    return bt


def conv_epi_h(x, weight):
    """x: (N, u, v, c, h, w) f32; weight: (32, c, 3, 3) f32 (PyTorch OIHW)."""
    N, u, v, c, h, w = x.shape
    B = N * u * h                       # number of (c, v, w) conv images
    S = v * w                           # columns per image
    M = B * S
    K9 = KSIZE * KSIZE * c

    bt = _choose_images_per_block(B, S)     # images per grid step
    bm = bt * S                             # output columns per grid step
    num_m = pl.cdiv(B, bt)
    b_pad = num_m * bt
    m_pad = b_pad * S

    # ---- glue (1x-sized data only) -----------------------------------------
    # (N,u,v,c,h,w) -> (c, N,u,h, v,w) -> (c, M): channel-major, M lane-dense.
    x_cm = jnp.transpose(x, (3, 0, 1, 4, 2, 5)).reshape(c, M).astype(jnp.bfloat16)
    if m_pad != M:                          # pad with whole zero images (relu(W@0)=0)
        x_cm = jnp.pad(x_cm, ((0, 0), (0, m_pad - M)))

    # OIHW -> (o, ky, kx, ch) -> (32, 9c); K-order = (tap, channel), matching P below.
    w2 = jnp.transpose(weight, (0, 2, 3, 1)).reshape(C_OUT, K9).astype(jnp.bfloat16)

    # Per-tap boundary masks for one image period, tiled to the block width.  Blocks
    # are image-aligned, so the same (9, bm) template is valid for every grid step.
    yy, xx = np.divmod(np.arange(S), w)
    rows = []
    for ky in range(KSIZE):
        for kx in range(KSIZE):
            dy, dx = ky - 1, kx - 1
            ok = (yy + dy >= 0) & (yy + dy < v) & (xx + dx >= 0) & (xx + dx < w)
            rows.append(ok)
    mask_np = np.tile(np.stack(rows).astype(np.float32), (1, bt))        # (9, bm)
    mask = jnp.asarray(mask_np, dtype=jnp.bfloat16)                      # 0/1 exact

    # ---- kernel: fused im2col + single matmul + ReLU ------------------------
    def kernel(w_ref, m_ref, x_ref, o_ref, p_ref):
        # w_ref: (32, 9c)  weights, VMEM-resident across the grid
        # m_ref: (9, bm)   per-tap boundary masks, VMEM-resident across the grid
        # x_ref: (c, bm)   raw input columns for this step (lane-dense)
        # o_ref: (32, bm)  output columns (lane-dense, unmasked stores)
        # p_ref: (9c, bm)  VMEM scratch holding the im2col patch block
        p_ref[...] = jnp.zeros_like(p_ref)      # block-edge columns must read as zero
        for ky in range(KSIZE):
            for kx in range(KSIZE):
                t = ky * KSIZE + kx
                d = (ky - 1) * w + (kx - 1)     # flat column shift for this tap
                a = max(0, -d)                  # first in-block destination column
                length = bm - abs(d)
                src = x_ref[:, pl.ds(a + d, length)]                 # (c, length)
                msk = m_ref[pl.ds(t, 1), pl.ds(a, length)]           # (1, length)
                p_ref[pl.ds(t * c, c), pl.ds(a, length)] = src * msk
        acc = jnp.dot(w_ref[...], p_ref[...], preferred_element_type=jnp.float32)
        o_ref[...] = jnp.maximum(acc, 0.0).astype(o_ref.dtype)

    out_flat = pl.pallas_call(
        kernel,
        out_shape=jax.ShapeDtypeStruct((C_OUT, m_pad), jnp.float32),
        grid=(num_m,),
        in_specs=[
            pl.BlockSpec((C_OUT, K9), lambda m: (0, 0)),   # weights: resident
            pl.BlockSpec((9, bm), lambda m: (0, 0)),       # masks: resident
            pl.BlockSpec((c, bm), lambda m: (0, m)),       # raw input block (no 9x inflation)
        ],
        out_specs=pl.BlockSpec((C_OUT, bm), lambda m: (0, m)),
        scratch_shapes=[pltpu.VMEM((K9, bm), jnp.bfloat16)],
        compiler_params=pltpu.CompilerParams(
            dimension_semantics=("parallel",),
            vmem_limit_bytes=32 * 1024 * 1024),            # <= v7x's 64 MiB physical
    )(w2, mask, x_cm)

    # ---- glue: (32, M) -> (N, u, v, 32, h, w) -------------------------------
    out = out_flat[:, :M].reshape(C_OUT, N, u, h, v, w)
    return jnp.transpose(out, (1, 2, 4, 0, 3, 5))


def _reference(x, weight):
    """Pure-JAX reference (lax conv) for correctness check."""
    N, u, v, c, h, w = x.shape
    xb = jnp.transpose(x, (0, 1, 4, 3, 2, 5)).reshape(N * u * h, c, v, w)
    out = jax.lax.conv_general_dilated(
        xb, weight, window_strides=(1, 1), padding=((1, 1), (1, 1)),
        dimension_numbers=("NCHW", "OIHW", "NCHW"))
    out = jnp.maximum(out, 0.0)
    out = out.reshape(N, u, h, C_OUT, v, w)
    return jnp.transpose(out, (0, 1, 4, 3, 2, 5))


if __name__ == "__main__":
    # Small shapes consistent with the module's 6-D input.
    N, u, v, c, h, w = 1, 2, 8, 4, 2, 16
    key = jax.random.PRNGKey(0)
    kx, kw = jax.random.split(key)

    x = jax.random.normal(kx, (N, u, v, c, h, w), dtype=jnp.float32)

    # Deterministic Conv2d init (PyTorch-style uniform +/- 1/sqrt(fan_in)), bias=False.
    fan_in = c * KSIZE * KSIZE
    bound = 1.0 / math.sqrt(fan_in)
    weight = jax.random.uniform(kw, (C_OUT, c, KSIZE, KSIZE),
                                dtype=jnp.float32, minval=-bound, maxval=bound)

    conv = jax.jit(conv_epi_h)
    out = jax.block_until_ready(conv(x, weight))
    ref = jax.block_until_ready(_reference(x, weight))

    assert out.shape == (N, u, v, C_OUT, h, w), out.shape
    # bf16 MXU operands with f32 accumulation -> loosened tolerance (review note).
    np.testing.assert_allclose(np.asarray(out), np.asarray(ref), rtol=2e-2, atol=2e-2)
    print("KERNEL_OK")
</pallas_src>

<mosaic_0001>
module attributes {stable_mosaic.version = 11 : i64} {
  func.func @kernel(%arg0: i32, %arg1: memref<32x36xbf16, #tpu.memory_space<vmem>>, %arg2: memref<9x512xbf16, #tpu.memory_space<vmem>>, %arg3: memref<4x512xbf16, #tpu.memory_space<vmem>>, %arg4: memref<32x512xf32, #tpu.memory_space<vmem>>, %arg5: memref<36x512xbf16, #tpu.memory_space<vmem>>) attributes {dimension_semantics = [#tpu.dimension_semantics<parallel>], iteration_bounds = array<i64: 1>, scalar_prefetch = 0 : i64, scratch_operands = 1 : i64, tpu.core_type = #tpu.core_type<tc>, window_params = [{pipeline_mode = #tpu.pipeline_mode<synchronous>, transform_indices = @transform_0, window_bounds = array<i64: 32, 36>}, {pipeline_mode = #tpu.pipeline_mode<synchronous>, transform_indices = @transform_1, window_bounds = array<i64: 9, 512>}, {transform_indices = @transform_2, window_bounds = array<i64: 4, 512>}, {transform_indices = @transform_3, window_bounds = array<i64: 32, 512>}]} {
    %cst = arith.constant 0.000000e+00 : bf16
    %0 = vector.broadcast %cst : bf16 to vector<36x512xbf16>
    %c0 = arith.constant 0 : index
    %c0_0 = arith.constant 0 : index
    %1 = vector.load %arg5[%c0, %c0_0] : memref<36x512xbf16, #tpu.memory_space<vmem>>, vector<36x512xbf16>
    tpu.vector_store %arg5[%c0, %c0_0], %0 {strides = array<i32>} : memref<36x512xbf16, #tpu.memory_space<vmem>>, vector<36x512xbf16>,
    %c0_1 = arith.constant 0 : index
    %c0_2 = arith.constant 0 : index
    %2 = vector.load %arg3[%c0_1, %c0_2] : memref<4x512xbf16, #tpu.memory_space<vmem>>, vector<4x495xbf16>
    %c0_3 = arith.constant 0 : index
    %c17 = arith.constant 17 : index
    %3 = vector.load %arg2[%c0_3, %c17] : memref<9x512xbf16, #tpu.memory_space<vmem>>, vector<1x495xbf16>
    %4 = vector.broadcast %3 : vector<1x495xbf16> to vector<4x495xbf16>
    %5 = arith.mulf %2, %4 : vector<4x495xbf16>
    %c0_4 = arith.constant 0 : index
    %c17_5 = arith.constant 17 : index
    %6 = vector.load %arg5[%c0_4, %c17_5] : memref<36x512xbf16, #tpu.memory_space<vmem>>, vector<4x495xbf16>
    tpu.vector_store %arg5[%c0_4, %c17_5], %5 {strides = array<i32>} : memref<36x512xbf16, #tpu.memory_space<vmem>>, vector<4x495xbf16>,
    %c0_6 = arith.constant 0 : index
    %c0_7 = arith.constant 0 : index
    %7 = vector.load %arg3[%c0_6, %c0_7] : memref<4x512xbf16, #tpu.memory_space<vmem>>, vector<4x496xbf16>
    %c1 = arith.constant 1 : index
    %c16 = arith.constant 16 : index
    %8 = vector.load %arg2[%c1, %c16] : memref<9x512xbf16, #tpu.memory_space<vmem>>, vector<1x496xbf16>
    %9 = vector.broadcast %8 : vector<1x496xbf16> to vector<4x496xbf16>
    %10 = arith.mulf %7, %9 : vector<4x496xbf16>
    %c4 = arith.constant 4 : index
    %c16_8 = arith.constant 16 : index
    %11 = vector.load %arg5[%c4, %c16_8] : memref<36x512xbf16, #tpu.memory_space<vmem>>, vector<4x496xbf16>
    tpu.vector_store %arg5[%c4, %c16_8], %10 {strides = array<i32>} : memref<36x512xbf16, #tpu.memory_space<vmem>>, vector<4x496xbf16>,
    %c0_9 = arith.constant 0 : index
    %c0_10 = arith.constant 0 : index
    %12 = vector.load %arg3[%c0_9, %c0_10] : memref<4x512xbf16, #tpu.memory_space<vmem>>, vector<4x497xbf16>
    %c2 = arith.constant 2 : index
    %c15 = arith.constant 15 : index
    %13 = vector.load %arg2[%c2, %c15] : memref<9x512xbf16, #tpu.memory_space<vmem>>, vector<1x497xbf16>
    %14 = vector.broadcast %13 : vector<1x497xbf16> to vector<4x497xbf16>
    %15 = arith.mulf %12, %14 : vector<4x497xbf16>
    %c8 = arith.constant 8 : index
    %c15_11 = arith.constant 15 : index
    %16 = vector.load %arg5[%c8, %c15_11] : memref<36x512xbf16, #tpu.memory_space<vmem>>, vector<4x497xbf16>
    tpu.vector_store %arg5[%c8, %c15_11], %15 {strides = array<i32>} : memref<36x512xbf16, #tpu.memory_space<vmem>>, vector<4x497xbf16>,
    %c0_12 = arith.constant 0 : index
    %c0_13 = arith.constant 0 : index
    %17 = vector.load %arg3[%c0_12, %c0_13] : memref<4x512xbf16, #tpu.memory_space<vmem>>, vector<4x511xbf16>
    %c3 = arith.constant 3 : index
    %c1_14 = arith.constant 1 : index
    %18 = vector.load %arg2[%c3, %c1_14] : memref<9x512xbf16, #tpu.memory_space<vmem>>, vector<1x511xbf16>
    %19 = vector.broadcast %18 : vector<1x511xbf16> to vector<4x511xbf16>
    %20 = arith.mulf %17, %19 : vector<4x511xbf16>
    %c12 = arith.constant 12 : index
    %c1_15 = arith.constant 1 : index
    %21 = vector.load %arg5[%c12, %c1_15] : memref<36x512xbf16, #tpu.memory_space<vmem>>, vector<4x511xbf16>
    tpu.vector_store %arg5[%c12, %c1_15], %20 {strides = array<i32>} : memref<36x512xbf16, #tpu.memory_space<vmem>>, vector<4x511xbf16>,
    %c0_16 = arith.constant 0 : index
    %c0_17 = arith.constant 0 : index
    %22 = vector.load %arg3[%c0_16, %c0_17] : memref<4x512xbf16, #tpu.memory_space<vmem>>, vector<4x512xbf16>
    %c4_18 = arith.constant 4 : index
    %c0_19 = arith.constant 0 : index
    %23 = vector.load %arg2[%c4_18, %c0_19] : memref<9x512xbf16, #tpu.memory_space<vmem>>, vector<1x512xbf16>
    %24 = vector.broadcast %23 : vector<1x512xbf16> to vector<4x512xbf16>
    %25 = arith.mulf %22, %24 : vector<4x512xbf16>
    %c16_20 = arith.constant 16 : index
    %c0_21 = arith.constant 0 : index
    %26 = vector.load %arg5[%c16_20, %c0_21] : memref<36x512xbf16, #tpu.memory_space<vmem>>, vector<4x512xbf16>
    tpu.vector_store %arg5[%c16_20, %c0_21], %25 {strides = array<i32>} : memref<36x512xbf16, #tpu.memory_space<vmem>>, vector<4x512xbf16>,
    %c0_22 = arith.constant 0 : index
    %c1_23 = arith.constant 1 : index
    %27 = vector.load %arg3[%c0_22, %c1_23] : memref<4x512xbf16, #tpu.memory_space<vmem>>, vector<4x511xbf16>
    %c5 = arith.constant 5 : index
    %c0_24 = arith.constant 0 : index
    %28 = vector.load %arg2[%c5, %c0_24] : memref<9x512xbf16, #tpu.memory_space<vmem>>, vector<1x511xbf16>
    %29 = vector.broadcast %28 : vector<1x511xbf16> to vector<4x511xbf16>
    %30 = arith.mulf %27, %29 : vector<4x511xbf16>
    %c20 = arith.constant 20 : index
    %c0_25 = arith.constant 0 : index
    %31 = vector.load %arg5[%c20, %c0_25] : memref<36x512xbf16, #tpu.memory_space<vmem>>, vector<4x511xbf16>
    tpu.vector_store %arg5[%c20, %c0_25], %30 {strides = array<i32>} : memref<36x512xbf16, #tpu.memory_space<vmem>>, vector<4x511xbf16>,
    %c0_26 = arith.constant 0 : index
    %c15_27 = arith.constant 15 : index
    %32 = vector.load %arg3[%c0_26, %c15_27] : memref<4x512xbf16, #tpu.memory_space<vmem>>, vector<4x497xbf16>
    %c6 = arith.constant 6 : index
    %c0_28 = arith.constant 0 : index
    %33 = vector.load %arg2[%c6, %c0_28] : memref<9x512xbf16, #tpu.memory_space<vmem>>, vector<1x497xbf16>
    %34 = vector.broadcast %33 : vector<1x497xbf16> to vector<4x497xbf16>
    %35 = arith.mulf %32, %34 : vector<4x497xbf16>
    %c24 = arith.constant 24 : index
    %c0_29 = arith.constant 0 : index
    %36 = vector.load %arg5[%c24, %c0_29] : memref<36x512xbf16, #tpu.memory_space<vmem>>, vector<4x497xbf16>
    tpu.vector_store %arg5[%c24, %c0_29], %35 {strides = array<i32>} : memref<36x512xbf16, #tpu.memory_space<vmem>>, vector<4x497xbf16>,
    %c0_30 = arith.constant 0 : index
    %c16_31 = arith.constant 16 : index
    %37 = vector.load %arg3[%c0_30, %c16_31] : memref<4x512xbf16, #tpu.memory_space<vmem>>, vector<4x496xbf16>
    %c7 = arith.constant 7 : index
    %c0_32 = arith.constant 0 : index
    %38 = vector.load %arg2[%c7, %c0_32] : memref<9x512xbf16, #tpu.memory_space<vmem>>, vector<1x496xbf16>
    %39 = vector.broadcast %38 : vector<1x496xbf16> to vector<4x496xbf16>
    %40 = arith.mulf %37, %39 : vector<4x496xbf16>
    %c28 = arith.constant 28 : index
    %c0_33 = arith.constant 0 : index
    %41 = vector.load %arg5[%c28, %c0_33] : memref<36x512xbf16, #tpu.memory_space<vmem>>, vector<4x496xbf16>
    tpu.vector_store %arg5[%c28, %c0_33], %40 {strides = array<i32>} : memref<36x512xbf16, #tpu.memory_space<vmem>>, vector<4x496xbf16>,
    %c0_34 = arith.constant 0 : index
    %c17_35 = arith.constant 17 : index
    %42 = vector.load %arg3[%c0_34, %c17_35] : memref<4x512xbf16, #tpu.memory_space<vmem>>, vector<4x495xbf16>
    %c8_36 = arith.constant 8 : index
    %c0_37 = arith.constant 0 : index
    %43 = vector.load %arg2[%c8_36, %c0_37] : memref<9x512xbf16, #tpu.memory_space<vmem>>, vector<1x495xbf16>
    %44 = vector.broadcast %43 : vector<1x495xbf16> to vector<4x495xbf16>
    %45 = arith.mulf %42, %44 : vector<4x495xbf16>
    %c32 = arith.constant 32 : index
    %c0_38 = arith.constant 0 : index
    %46 = vector.load %arg5[%c32, %c0_38] : memref<36x512xbf16, #tpu.memory_space<vmem>>, vector<4x495xbf16>
    tpu.vector_store %arg5[%c32, %c0_38], %45 {strides = array<i32>} : memref<36x512xbf16, #tpu.memory_space<vmem>>, vector<4x495xbf16>,
    %c0_39 = arith.constant 0 : index
    %c0_40 = arith.constant 0 : index
    %47 = vector.load %arg1[%c0_39, %c0_40] : memref<32x36xbf16, #tpu.memory_space<vmem>>, vector<32x36xbf16>
    %c0_41 = arith.constant 0 : index
    %c0_42 = arith.constant 0 : index
    %48 = vector.load %arg5[%c0_41, %c0_42] : memref<36x512xbf16, #tpu.memory_space<vmem>>, vector<36x512xbf16>
    %cst_43 = arith.constant dense<0.000000e+00> : vector<32x512xf32>
    %49 = tpu.matmul %47, %48, %cst_43 {dimension_numbers = #tpu.dot_dimension_numbers<[1], [0], [0], [1], [0, 0, 1, 1], [], []>} : vector<32x36xbf16>, vector<36x512xbf16>, vector<32x512xf32> -> vector<32x512xf32>
    %cst_44 = arith.constant 0.000000e+00 : f32
    %50 = vector.broadcast %cst_44 : f32 to vector<32x512xf32>
    %51 = arith.maximumf %49, %50 : vector<32x512xf32>
    %c0_45 = arith.constant 0 : index
    %c0_46 = arith.constant 0 : index
    %52 = vector.load %arg4[%c0_45, %c0_46] : memref<32x512xf32, #tpu.memory_space<vmem>>, vector<32x512xf32>
    tpu.vector_store %arg4[%c0_45, %c0_46], %51 {strides = array<i32>} : memref<32x512xf32, #tpu.memory_space<vmem>>, vector<32x512xf32>,
    return
  }
  func.func @transform_0(%arg0: i32) -> (i32, i32) {
    %c0_i32 = arith.constant 0 : i32
    %c0_i32_0 = arith.constant 0 : i32
    %c0_i32_1 = arith.constant 0 : i32
    return %c0_i32, %c0_i32_0 : i32, i32
  }
  func.func @transform_1(%arg0: i32) -> (i32, i32) {
    %c0_i32 = arith.constant 0 : i32
    %c0_i32_0 = arith.constant 0 : i32
    %c0_i32_1 = arith.constant 0 : i32
    return %c0_i32, %c0_i32_0 : i32, i32
  }
  func.func @transform_2(%arg0: i32) -> (i32, i32) {
    %c0_i32 = arith.constant 0 : i32
    %c0_i32_0 = arith.constant 0 : i32
    return %c0_i32, %arg0 : i32, i32
  }
  func.func @transform_3(%arg0: i32) -> (i32, i32) {
    %c0_i32 = arith.constant 0 : i32
    %c0_i32_0 = arith.constant 0 : i32
    return %c0_i32, %arg0 : i32, i32
  }
}

</mosaic_0001>

<bundles_post_ra>
// kernel: conv_epi_h.1
= control target key start
LH: loop header
LB: loop body
LE: loop exit
PB: predicated region body
PF: predicated region fallthrough
CT: control target
= control target key end

     0   :  { %v41_v0 = vlaneseq  ;;  %v1286_v1 = vmov 1983009808   ;;  %s1287_s30 = smov 17   ;;  %s1288_s6 = smov 15   ;;  %vm116_vm0 = vcmask 138240   ;;  %vm325_vm1 = vcmask 121856   ;;  %s1607_s1 = inlined_call_operand.vmem [shape: bf16[9,512], index: 1, kind: input, shape index: {}]   ;;  %s1608_s2 = inlined_call_operand.vmem [shape: bf16[4,512], index: 2, kind: input, shape index: {}]   ;;  %s1609_s0 = inlined_call_operand.vmem [shape: bf16[32,36], index: 0, kind: input, shape index: {}]   ;;  %s1610_s3 = inlined_call_operand.vmem [shape: f32[32,512], index: 3, kind: output, shape index: {}]  }
   0x1   :  { %v73_v2 = vunpack.c.l.s4 %v1286_v1  ;;  %v832_v3 = vld [vmem:[%s1607_s1 + $0x10] sm:$0x11]  ;;  %v833_v4 = vld [vmem:[%s1607_s1 + $0x18] sm:$0x11]  ;;  %v629_v5 = vld [vmem:[%s1607_s1] sm:$0x88] }
   0x2   :  { %v1325_v6 = vshrl.u32 %v41_v0, 7  ;;  %v1199_v7 = vcombine.low %v832_v3, %v832_v3  ;;  %v1200_v8 = vcombine.high %v832_v3, %v832_v3  ;;  %v1201_v9 = vcombine.low %v833_v4, %v833_v4  ;;  %v630_v10 = vld [vmem:[%s1607_s1 + $0x8] sm:$0x88]  ;;  %v26_v23 = vld [vmem:[%s1607_s1] sm:$0x11]  ;;  %s1289_s11 = smov 111  }
   0x3   :  { %v74_v11 = vunpack.c.0.s8 %v73_v2  ;;  %v1202_v12 = vcombine.high %v833_v4, %v833_v4  ;;  %v1191_v13 = vcombine.low %v629_v5, %v629_v5  ;;  %v1192_v14 = vcombine.high %v629_v5, %v629_v5  ;;  %v27_v32 = vld [vmem:[%s1607_s1 + $0x8] sm:$0x11]  ;;  %v525_v49 = vld [vmem:[%s1607_s1] sm:$0x44]  ;;  %v526_v54 = vld [vmem:[%s1607_s1 + $0x8] sm:$0x44] }
   0x4   :  { %v1331_v15 = vsub.s32 0, %v1325_v6  ;;  %v845_v16 = vpack.i.b16 %v1199_v7, %v1199_v7  ;;  %v852_v17 = vpack.i.b16 %v1200_v8, %v1200_v8  ;;  %v859_v18 = vpack.i.b16 %v1201_v9, %v1201_v9  ;;  %v235_v59 = vld [vmem:[%s1607_s1] sm:$0x22]  ;;  %v236_v4 = vld [vmem:[%s1607_s1 + $0x8] sm:$0x22]  ;;  %s1290_s16 = smov 1  }
   0x5   :  { %v1334_v19 = vsub.s32 %v74_v11, %v1325_v6  ;;  %v866_v20 = vpack.i.b16 %v1202_v12, %v1202_v12  ;;  %v1193_v21 = vcombine.low %v630_v10, %v630_v10  ;;  %v1194_v22 = vcombine.high %v630_v10, %v630_v10  ;;  %s1291_s21 = smov 113   ;;  %s1292_s22 = smov 16  }
   0x6   :  { %v850_v24 = vrot.slane %v845_v16, %v1331_v15  ;;  %v857_v25 = vrot.slane %v852_v17, %v1331_v15  ;;  %v864_v26 = vrot.slane %v859_v18, %v1331_v15  ;;  %v642_v27 = vpack.i.b16 %v1191_v13, %v1191_v13  ;;  %s1293_s23 = smov 112   ;;  %s1294_s24 = smov 127  }
   0x7   :  { %v871_v28 = vrot.slane %v866_v20, %v1331_v15  ;;  %v1344_v29 = vsub.s32 3, %v1325_v6  ;;  %v649_v30 = vpack.i.b16 %v1192_v14, %v1192_v14  ;;  %v656_v31 = vpack.i.b16 %v1193_v21, %v1193_v21 }
   0x8   :  { %v876_v33 = vcombine.low %v850_v24, %v857_v25  ;;  %v663_v34 = vpack.i.b16 %v1194_v22, %v1194_v22  ;;  %v1165_v35 = vcombine.low %v26_v23, %v26_v23  ;;  %v1166_v36 = vcombine.high %v26_v23, %v26_v23  ;;  %v729_v24 = vld [vmem:[%s1607_s1] sm:$0x88] }
   0x9   :  { %v877_v37 = vcombine.low %v864_v26, %v871_v28  ;;  %v647_v38 = vrot.slane %v642_v27, %v1344_v29  ;;  %v654_v39 = vrot.slane %v649_v30, %v1344_v29  ;;  %v661_v40 = vrot.slane %v656_v31, %v1344_v29 }
   0xa   :  { %v884_v41 = vrot.slane %v876_v33, %v1334_v19  ;;  %v668_v42 = vrot.slane %v663_v34, %v1344_v29  ;;  %v1167_v43 = vcombine.low %v27_v32, %v27_v32  ;;  %v1168_v44 = vcombine.high %v27_v32, %v27_v32  ;;  %v730_v34 = vld [vmem:[%s1607_s1 + $0x8] sm:$0x88] }
   0xb   :  { %v891_v45 = vrot.slane %v877_v37, %v1334_v19  ;;  %v673_v46 = vcombine.low %v647_v38, %v654_v39  ;;  %v39_v47 = vpack.i.b16 %v1165_v35, %v1165_v35  ;;  %v46_v48 = vpack.i.b16 %v1166_v36, %v1166_v36 }
   0xc   :  { %v674_v50 = vcombine.low %v661_v40, %v668_v42  ;;  %v53_v51 = vpack.i.b16 %v1167_v43, %v1167_v43  ;;  %v60_v52 = vpack.i.b16 %v1168_v44, %v1168_v44  ;;  %v1359_v53 = vsub.s32 2, %v1325_v6 }
   0xd   :  { %v892_v55 = vcombine.low %v884_v41, %v891_v45  ;;  %v681_v56 = vrot.slane %v673_v46, %v1334_v19  ;;  %v44_v57 = vrot.slane %v39_v47, %v1331_v15  ;;  %v51_v58 = vrot.slane %v46_v48, %v1331_v15  ;;  %v129_v46 = vld [vmem:[%s1607_s1] sm:$0x11] }
   0xe   :  { %v688_v60 = vrot.slane %v674_v50, %v1334_v19  ;;  %v58_v61 = vrot.slane %v53_v51, %v1331_v15  ;;  %v65_v62 = vrot.slane %v60_v52, %v1331_v15  ;;  %v1187_v63 = vcombine.low %v525_v49, %v525_v49 }
   0xf   :  { %893 = vrot.lane.b32.xlu0 %v892_v55, %s1287_s30  ;;  %v70_v0 = vcombine.low %v44_v57, %v51_v58  ;;  %v1188_v1 = vcombine.high %v525_v49, %v525_v49  ;;  %v1189_v2 = vcombine.low %v526_v54, %v526_v54  ;;  %v1190_v3 = vcombine.high %v526_v54, %v526_v54 }
  0x10   :  { %v689_v5 = vcombine.low %v681_v56, %v688_v60  ;;  %v71_v7 = vcombine.low %v58_v61, %v65_v62  ;;  %v538_v8 = vshrl.u32 %v1187_v63, 16  ;;  %v1173_v9 = vcombine.low %v235_v59, %v235_v59  ;;  %v130_v56 = vld [vmem:[%s1607_s1 + $0x8] sm:$0x11] }
  0x11   :  { %v78_v10 = vrot.slane %v70_v0, %v1334_v19  ;;  %v546_v11 = vshrl.u32 %v1188_v1, 16  ;;  %v554_v12 = vshrl.u32 %v1189_v2, 16  ;;  %v562_v13 = vshrl.u32 %v1190_v3, 16 }
  0x12   :  { %690 = vrot.lane.b32.xlu1 %v689_v5, %s1288_s6  ;;  %v85_v14 = vrot.slane %v71_v7, %v1334_v19  ;;  %v539_v16 = vpack.i.b16 %v538_v8, %v538_v8  ;;  %v1174_v17 = vcombine.high %v235_v59, %v235_v59  ;;  %v1175_v18 = vcombine.low %v236_v4, %v236_v4  ;;  %v336_v5 = vld [vmem:[%s1607_s1] sm:$0x22] }
  0x13   :  { %v547_v20 = vpack.i.b16 %v546_v11, %v546_v11  ;;  %v555_v21 = vpack.i.b16 %v554_v12, %v554_v12  ;;  %v563_v22 = vpack.i.b16 %v562_v13, %v562_v13  ;;  %v1176_v23 = vcombine.high %v236_v4, %v236_v4 }
  0x14   :  { %v86_v25 = vcombine.low %v78_v10, %v85_v14  ;;  %v544_v26 = vrot.slane %v539_v16, %v1359_v53  ;;  %v248_v27 = vpack.i.b16 %v1173_v9, %v1173_v9  ;;  %v1385_v28 = vsub.s32 1, %v1325_v6  ;;  %v337_v16 = vld [vmem:[%s1607_s1 + $0x8] sm:$0x22] }
  0x15   :  { %v552_v30 = vrot.slane %v547_v20, %v1359_v53  ;;  %v560_v31 = vrot.slane %v555_v21, %v1359_v53  ;;  %v568_v32 = vrot.slane %v563_v22, %v1359_v53  ;;  %v255_v33 = vpack.i.b16 %v1174_v17, %v1174_v17 }
  0x16   :  { %87 = vrot.lane.b32.xlu0 %v86_v25, %s1289_s11  ;;  %v253_v35 = vrot.slane %v248_v27, %v1385_v28  ;;  %v262_v36 = vpack.i.b16 %v1175_v18, %v1175_v18  ;;  %v269_v37 = vpack.i.b16 %v1176_v23, %v1176_v23  ;;  %v1195_v6 = vcombine.low %v729_v24, %v729_v24 }
  0x17   :  { %v573_v38 = vcombine.low %v544_v26, %v552_v30  ;;  %v574_v39 = vcombine.low %v560_v31, %v568_v32  ;;  %v260_v40 = vrot.slane %v255_v33, %v1385_v28  ;;  %v1196_v41 = vcombine.high %v729_v24, %v729_v24 }
  0x18   :  { %v267_v42 = vrot.slane %v262_v36, %v1385_v28  ;;  %v274_v43 = vrot.slane %v269_v37, %v1385_v28  ;;  %v1197_v44 = vcombine.low %v730_v34, %v730_v34  ;;  %v1198_v45 = vcombine.high %v730_v34, %v730_v34 }
  0x19   :  { %v581_v47 = vrot.slane %v573_v38, %v1334_v19  ;;  %v588_v48 = vrot.slane %v574_v39, %v1334_v19  ;;  %v279_v49 = vcombine.low %v253_v35, %v260_v40  ;;  %v742_v50 = vshrl.u32 %v1195_v6, 16 }
  0x1a   :  { %v280_v51 = vcombine.low %v267_v42, %v274_v43  ;;  %v750_v52 = vshrl.u32 %v1196_v41, 16  ;;  %v758_v54 = vshrl.u32 %v1197_v44, 16  ;;  %v766_v55 = vshrl.u32 %v1198_v45, 16 }
  0x1b   :  { %v589_v57 = vcombine.low %v581_v47, %v588_v48  ;;  %v287_v58 = vrot.slane %v279_v49, %v1334_v19  ;;  %v743_v59 = vpack.i.b16 %v742_v50, %v742_v50  ;;  %v1169_v60 = vcombine.low %v129_v46, %v129_v46 }
  0x1c   :  { %v294_v61 = vrot.slane %v280_v51, %v1334_v19  ;;  %v751_v62 = vpack.i.b16 %v750_v52, %v750_v52  ;;  %v759_v63 = vpack.i.b16 %v758_v54, %v758_v54  ;;  %v767_v0 = vpack.i.b16 %v766_v55, %v766_v55 }
  0x1d   :  { %590 = vrot.lane.b32.xlu0 %v589_v57, %s1290_s16  ;;  %v748_v1 = vrot.slane %v743_v59, %v1344_v29  ;;  %v1170_v2 = vcombine.high %v129_v46, %v129_v46  ;;  %v1171_v3 = vcombine.low %v130_v56, %v130_v56  ;;  %v1172_v4 = vcombine.high %v130_v56, %v130_v56 }
  0x1e   :  { %v295_v7 = vcombine.low %v287_v58, %v294_v61  ;;  %v756_v8 = vrot.slane %v751_v62, %v1344_v29  ;;  %v764_v9 = vrot.slane %v759_v63, %v1344_v29  ;;  %v772_v10 = vrot.slane %v767_v0, %v1344_v29  ;;  %v442_v58 = vld [vmem:[%s1607_s1 + $0x8] sm:$0x44]  ;;  %v1458_v0 = vld [vmem:[%s1608_s2] sm:$0xff] }
  0x1f   :  { %v142_v11 = vshrl.u32 %v1169_v60, 16  ;;  %v150_v12 = vshrl.u32 %v1170_v2, 16  ;;  %v158_v13 = vshrl.u32 %v1171_v3, 16  ;;  %v166_v14 = vshrl.u32 %v1172_v4, 16 }
  0x20   :  { %v777_v17 = vcombine.low %v748_v1, %v756_v8  ;;  %v778_v18 = vcombine.low %v764_v9, %v772_v10  ;;  %v1177_v20 = vcombine.low %v336_v5, %v336_v5  ;;  %v1178_v21 = vcombine.high %v336_v5, %v336_v5 }
  0x21   :  { %296 = vrot.lane.b32.xlu0 %v295_v7, %s1291_s21  ;;  %v143_v22 = vpack.i.b16 %v142_v11, %v142_v11  ;;  %v151_v23 = vpack.i.b16 %v150_v12, %v150_v12  ;;  %v159_v24 = vpack.i.b16 %v158_v13, %v158_v13  ;;  %v167_v25 = vpack.i.b16 %v166_v14, %v166_v14 }
  0x22   :  { %v785_v29 = vrot.slane %v777_v17, %v1334_v19  ;;  %v792_v26 = vrot.slane %v778_v18, %v1334_v19  ;;  %v1179_v27 = vcombine.low %v337_v16, %v337_v16  ;;  %v1180_v30 = vcombine.high %v337_v16, %v337_v16 }
  0x23   :  { %v148_v31 = vrot.slane %v143_v22, %v1331_v15  ;;  %v156_v32 = vrot.slane %v151_v23, %v1331_v15  ;;  %v164_v33 = vrot.slane %v159_v24, %v1331_v15  ;;  %v172_v34 = vrot.slane %v167_v25, %v1331_v15 }
  0x24   :  { %v793_v35 = vcombine.low %v785_v29, %v792_v26  ;;  %v349_v36 = vshrl.u32 %v1177_v20, 16  ;;  %v357_v37 = vshrl.u32 %v1178_v21, 16  ;;  %v365_v6 = vshrl.u32 %v1179_v27, 16 }
  0x25   :  { %v177_v38 = vcombine.low %v148_v31, %v156_v32  ;;  %v178_v39 = vcombine.low %v164_v33, %v172_v34  ;;  %v373_v40 = vshrl.u32 %v1180_v30, 16  ;;  %v1295_v57 = vmov 0  }
  0x26   :  { %794 = vrot.lane.b32.xlu1 %v793_v35, %s1292_s22  ;;  %v350_v41 = vpack.i.b16 %v349_v36, %v349_v36  ;;  %v358_v42 = vpack.i.b16 %v357_v37, %v357_v37  ;;  %v366_v43 = vpack.i.b16 %v365_v6, %v365_v6  ;;  %23 = vst [vmem:[#allocation2 + $0x40] sm:$0x33] %v1295_v57  ;;  %24 = vst [vmem:[#allocation2 + $0x48] sm:$0x33] %v1295_v57  ;;  %vm90_vm2 = vcmask 908288  }
  0x27   :  { %v185_v44 = vrot.slane %v177_v38, %v1334_v19  ;;  %v192_v45 = vrot.slane %v178_v39, %v1334_v19  ;;  %v374_v46 = vpack.i.b16 %v373_v40, %v373_v40  ;;  %15 = vst [vmem:[#allocation2] sm:$0xff] %v1295_v57  ;;  %16 = vst [vmem:[#allocation2 + $0x8] sm:$0xff] %v1295_v57  ;;  %1055 = vmatprep.mubr.bf16.mxu0 %v1295_v57  ;;  %vm1611_vm3 = vcmask 7168  }
  0x28   :  { %v355_v15 = vrot.slane %v350_v41, %v1385_v28  ;;  %v363_v47 = vrot.slane %v358_v42, %v1385_v28  ;;  %v371_v48 = vrot.slane %v366_v43, %v1385_v28  ;;  %17 = vst [vmem:[#allocation2 + $0x10] sm:$0xff] %v1295_v57  ;;  %18 = vst [vmem:[#allocation2 + $0x18] sm:$0xff] %v1295_v57  ;;  %1108 = vmatprep.mubr.bf16.mxu1 %v1295_v57  ;;  %vm299_vm4 = vcmask 924672  }
  0x29   :  { %v193_v49 = vcombine.low %v185_v44, %v192_v45  ;;  %v379_v50 = vrot.slane %v374_v46, %v1385_v28  ;;  %19 = vst [vmem:[#allocation2 + $0x20] sm:$0xff] %v1295_v57  ;;  %20 = vst [vmem:[#allocation2 + $0x28] sm:$0xff] %v1295_v57  ;;  %v441_v28 = vld [vmem:[%s1607_s1] sm:$0x44]  ;;  %v1183_v61 = vcombine.low %v442_v58, %v442_v58  ;;  %vm223_vm5 = vcmask 130048  }
  0x2a   :  { %v384_v51 = vcombine.low %v355_v15, %v363_v47  ;;  %21 = vst [vmem:[#allocation2 + $0x30] sm:$0xff] %v1295_v57  ;;  %22 = vst [vmem:[#allocation2 + $0x38] sm:$0xff] %v1295_v57  ;;  %v1181_v59 = vcombine.low %v441_v28, %v441_v28  ;;  %v1182_v60 = vcombine.high %v441_v28, %v441_v28  ;;  %vm197_vm6 = vcmask 916480  }
  0x2b   :  { %194 = vrot.lane.b32.xlu1 %v193_v49, %s1293_s23  ;;  %v385_v52 = vcombine.low %v371_v48, %v379_v50  ;;  %v1184_v62 = vcombine.high %v442_v58, %v442_v58  ;;  %v468_v4 = vpack.i.b16 %v1183_v61, %v1183_v61  ;;  %vm404_vm7 = vcmask 1039360  }
  0x2c   :  { %v392_v54 = vrot.slane %v384_v51, %v1334_v19  ;;  %v454_v2 = vpack.i.b16 %v1181_v59, %v1181_v59  ;;  %v461_v3 = vpack.i.b16 %v1182_v60, %v1182_v60  ;;  %vm724_vm8 = vcmask 1041408  }
  0x2d   :  { %v399_v55 = vrot.slane %v385_v52, %v1334_v19  ;;  %v475_v5 = vpack.i.b16 %v1184_v62, %v1184_v62  ;;  %v473_v13 = vrot.slane %v468_v4, %v1359_v53  ;;  %vm927_vm9 = vcmask 906244  }
  0x2e   :  { %v459_v9 = vrot.slane %v454_v2, %v1359_v53  ;;  %v466_v12 = vrot.slane %v461_v3, %v1359_v53  ;;  %vm118_vm10 = vcmask 1043456   ;;  %vm928_vm11 = vmor %vm927_vm9, %vm724_vm8  ;;  %vm123_vm12 = vcmask 1041544  }
  0x2f   :  { %v400_v56 = vcombine.low %v392_v54, %v399_v55  ;;  %v480_v14 = vrot.slane %v475_v5, %v1359_v53  ;;  %vm124_vm13 = vcmask 1045508   ;;  %vm624_vm15 = vcmask 1043458  }
  0x30   :  { %v485_v20 = vcombine.low %v459_v9, %v466_v12  ;;  %vm125_vm14 = vmor %vm124_vm13, %vm123_vm12  ;;  %vm625_vm9 = vcmask 1039366  }
  0x31   :  { %401 = vrot.lane.b32.xlu1 %v400_v56, %s1294_s24  ;;  %v486_v23 = vcombine.low %v473_v13, %v480_v14 }
  0x32   :  { %v493_v29 = vrot.slane %v485_v20, %v1334_v19 }
  0x33   :  { %v500_v26 = vrot.slane %v486_v23, %v1334_v19 }
  0x35   :  { %v501_v31 = vcombine.low %v493_v29, %v500_v26 }
  0x37   :  { %v503_v32 = vmul.bf16 %v1458_v0, %v501_v31 }
  0x39   :  { %v505_v36 = vcombine.high %v503_v32, %v503_v32  ;;  %1185 = vst.sshfl [vmem:[#allocation2 + $0x20] sm:$0xf pattern:$0x76325410] %v503_v32 }
  0x3b   :  { %1186 = vst.sshfl [vmem:[#allocation2 + $0x28] sm:$0xf pattern:$0x76325410] %v505_v36 }
  0x81   :  { %v894_v63 = vpop.permute.xlu0 %893 }
  0x82   :  { %v895_v1 = vrot.slane %v894_v63, 6 }
  0x84   :  { %v896_v7 = vsel %vm116_vm0, %v895_v1, %v894_v63  ;;  %v691_v8 = vpop.permute.xlu1 %690 }
  0x85   :  { %v898_v10 = vmul.bf16 %v896_v7, %v1458_v0  ;;  %v692_v11 = vrot.slane %v691_v8, 6 }
  0x87   :  { %v900_v16 = vcombine.high %v898_v10, %v898_v10  ;;  %v693_v17 = vsel %vm325_vm1, %v692_v11, %v691_v8  ;;  %v907_v18 = vrot.slane %v898_v10, %v1334_v19 }
  0x88   :  { %v695_v21 = vmul.bf16 %v1458_v0, %v693_v17  ;;  %v88_v22 = vpop.permute.xlu0 %87 }
  0x89   :  { %v89_v24 = vrot.slane %v88_v22, 2  ;;  %915 = vrot.lane.b32.xlu0 %v907_v18, %s1289_s11  ;;  %v914_v25 = vrot.slane %v900_v16, %v1334_v19 }
  0x8a   :  { %v704_v53 = vrot.slane %v695_v21, %v1334_v19  ;;  %v697_v40 = vcombine.high %v695_v21, %v695_v21 }
  0x8b   :  { %v91_v27 = vsel %vm90_vm2, %v88_v22, %v89_v24  ;;  %917 = vrot.lane.b32.xlu1 %v914_v25, %s1289_s11 }
  0x8c   :  { %v93_v30 = vmul.bf16 %v1458_v0, %v91_v27  ;;  %v711_v15 = vrot.slane %v697_v40, %v1334_v19 }
  0x8d   :  { %712 = vrot.lane.b32.xlu0 %v704_v53, %s1291_s21 }
  0x8e   :  { %v102_v34 = vrot.slane %v93_v30, %v1334_v19  ;;  %v95_v52 = vcombine.high %v93_v30, %v93_v30 }
  0x8f   :  { %v591_v33 = vpop.permute.xlu0 %590 }
  0x90   :  { %v592_v35 = vrot.slane %v591_v33, 6  ;;  %v109_v60 = vrot.slane %v95_v52, %v1334_v19 }
  0x91   :  { %110 = vrot.lane.b32.xlu0 %v102_v34, %s1287_s30 }
  0x92   :  { %v593_v37 = vsel %vm1611_vm3, %v592_v35, %v591_v33  ;;  %vm331_vm3 = vcmask 1041528  }
  0x93   :  { %v595_v6 = vmul.bf16 %v1458_v0, %v593_v37  ;;  %v297_v38 = vpop.permute.xlu0 %296 }
  0x94   :  { %v298_v39 = vrot.slane %v297_v38, 2 }
  0x95   :  { %v611_v41 = vrot.slane %v595_v6, %v1334_v19  ;;  %v597_v45 = vcombine.low %v595_v6, %v595_v6 }
  0x96   :  { %v300_v42 = vsel %vm299_vm4, %v297_v38, %v298_v39 }
  0x97   :  { %v302_v43 = vmul.bf16 %v1458_v0, %v300_v42  ;;  %614 = vrot.lane.b32.xlu1 %v611_v41, %s1294_s24  ;;  %v604_v51 = vrot.slane %v597_v45, %v1334_v19 }
  0x98   :  { %v795_v44 = vpop.permute.xlu1 %794 }
  0x99   :  { %v796_v46 = vrot.slane %v795_v44, 6  ;;  %v311_v47 = vrot.slane %v302_v43, %v1334_v19  ;;  %v304_v2 = vcombine.high %v302_v43, %v302_v43 }
  0x9b   :  { %v797_v48 = vsel %vm223_vm5, %v796_v46, %v795_v44  ;;  %714 = vrot.lane.b32.xlu1 %v711_v15, %s1291_s21  ;;  %319 = vrot.lane.b32.xlu0 %v311_v47, %s1288_s6  ;;  %v318_v8 = vrot.slane %v304_v2, %v1334_v19 }
  0x9c   :  { %v799_v49 = vmul.bf16 %v1458_v0, %v797_v48 }
  0x9d   :  { %v195_v50 = vpop.permute.xlu1 %194 }
  0x9e   :  { %v801_v54 = vcombine.low %v799_v49, %v799_v49  ;;  %v196_v55 = vrot.slane %v195_v50, 2  ;;  %v815_v56 = vrot.slane %v799_v49, %v1334_v19 }
  0x9f   :  { %612 = vrot.lane.b32.xlu0 %v604_v51, %s1294_s24 }
  0xa0   :  { %v198_v28 = vsel %vm197_vm6, %v195_v50, %v196_v55  ;;  %818 = vrot.lane.b32.xlu1 %v815_v56, %s1293_s23  ;;  %v808_v59 = vrot.slane %v801_v54, %v1334_v19 }
  0xa1   :  { %v200_v58 = vmul.bf16 %v1458_v0, %v198_v28 }
  0xa3   :  { %v202_v61 = vcombine.low %v200_v58, %v200_v58  ;;  %v402_v62 = vpop.permute.xlu1 %401  ;;  %816 = vrot.lane.b32.xlu0 %v808_v59, %s1293_s23  ;;  %v216_v4 = vrot.slane %v200_v58, %v1334_v19 }
  0xa4   :  { %v403_v63 = vrot.slane %v402_v62, 2  ;;  %112 = vrot.lane.b32.xlu1 %v109_v60, %s1287_s30 }
  0xa5   :  { %v209_v1 = vrot.slane %v202_v61, %v1334_v19 }
  0xa6   :  { %v405_v3 = vsel %vm404_vm7, %v402_v62, %v403_v63 }
  0xa7   :  { %v407_v5 = vmul.bf16 %v1458_v0, %v405_v3  ;;  %217 = vrot.lane.b32.xlu0 %v209_v1, %s1292_s22 }
  0xa8   :  { %219 = vrot.lane.b32.xlu1 %v216_v4, %s1292_s22 }
  0xa9   :  { %v409_v7 = vcombine.low %v407_v5, %v407_v5  ;;  %v423_v10 = vrot.slane %v407_v5, %v1334_v19 }
  0xab   :  { %v416_v9 = vrot.slane %v409_v7, %v1334_v19 }
  0xac   :  { %321 = vrot.lane.b32.xlu1 %v318_v8, %s1288_s6 }
  0xad   :  { %424 = vrot.lane.b32.xlu0 %v416_v9, %s1290_s16 }
  0xb0   :  { %426 = vrot.lane.b32.xlu1 %v423_v10, %s1290_s16 }
  0xfb   :  { %v916_v11 = vpop.permute.xlu0 %915 }
  0xfc   :  { %v919_v12 = vrot.slane %v916_v11, 4 }
  0xfd   :  { %v918_v0 = vpop.permute.xlu1 %917 }
  0xfe   :  { %v920_v13 = vrot.slane %v918_v0, 4 }
  0xff   :  { %v713_v14 = vpop.permute.xlu0 %712 }
 0x100   :  { %v921_v16 = vsel %vm118_vm10, %v919_v12, %v920_v13  ;;  %v923_v17 = vsel %vm90_vm2, %v918_v0, %v920_v13  ;;  %v716_v35 = vrot.slane %v713_v14, 4 }
 0x101   :  { %v922_v18 = vsel %vm90_vm2, %v916_v11, %v921_v16  ;;  %929 = vst.msk [vmem:[#allocation2 + $0x48] sm:$0x33] %vm928_vm11, %v923_v17  ;;  %vm626_vm2 = vmor %vm625_vm9, %vm624_vm15  ;;  %vm725_vm11 = vcmask 922628   ;;  %vm828_vm9 = vcmask 916486  }
 0x102   :  { %926 = vst [vmem:[#allocation2 + $0x40] sm:$0x33] %v922_v18  ;;  %vm726_vm12 = vmor %vm725_vm11, %vm724_vm8  ;;  %v1281_v18 = vld [vmem:[%s1609_s0] sm:$0xff]  }
 0x103   :  { %v111_v19 = vpop.permute.xlu0 %110 }
 0x104   :  { %v114_v20 = vrot.slane %v111_v19, 4 }
 0x106   :  { %v117_v21 = vsel %vm116_vm0, %v114_v20, %v111_v19 }
 0x107   :  { %126 = vst.msk [vmem:[#allocation2] sm:$0x33] %vm125_vm14, %v117_v21  ;;  %vm332_vm14 = vmor %vm124_vm13, %vm331_vm3  ;;  %vm229_vm3 = vcmask 1043586   ;;  %vm436_vm13 = vcmask 1043466   ;;  %v1285_v21 = vld [vmem:[%s1609_s0 + $0x8] sm:$0xff]  }
 0x108   :  { %v943_v22 = vld [vmem:[#allocation2 + $0x48] sm:$0x33] }
 0x109   :  { %v615_v23 = vpop.permute.xlu1 %614  ;;  %v1216_v24 = vcombine.high %v943_v22, %v943_v22  ;;  %v942_v25 = vld [vmem:[#allocation2 + $0x40] sm:$0x33]  ;;  %v1215_v29 = vcombine.low %v943_v22, %v943_v22 }
 0x10a   :  { %v617_v53 = vrot.slane %v615_v23, 4  ;;  %v1214_v26 = vcombine.high %v942_v25, %v942_v25  ;;  %v1213_v27 = vcombine.low %v942_v25, %v942_v25 }
 0x10b   :  { %1220 = vmatprep.subr.msk.bf16.mxu1 %vm724_vm8, %v1216_v24  ;;  %v1018_v30 = vsel %vm724_vm8, %v1215_v29, 0 }
 0x10c   :  { %v620_v31 = vsel %vm404_vm7, %v615_v23, %v617_v53  ;;  %1217 = vmatprep.subr.msk.bf16.mxu0 %vm724_vm8, %v1214_v26  ;;  %1087 = vmatpush1.bf16.msra.mxu1 %v1018_v30  ;;  %v1012_v32 = vsel %vm724_vm8, %v1213_v27, 0  ;;  %vm829_vm8 = vmor %vm828_vm9, %vm624_vm15 }
 0x10d   :  { %627 = vst.msk [vmem:[#allocation2 + $0x28] sm:$0xcc] %vm626_vm2, %v620_v31  ;;  %v715_v33 = vpop.permute.xlu1 %714  ;;  %v320_v34 = vpop.permute.xlu0 %319  ;;  %1034 = vmatpush1.bf16.msra.mxu0 %v1012_v32 }
 0x10e   :  { %v717_v36 = vrot.slane %v715_v33, 4  ;;  %v323_v37 = vrot.slane %v320_v34, 4 }
 0x110   :  { %v718_v6 = vsel %vm118_vm10, %v716_v35, %v717_v36  ;;  %v720_v38 = vsel %vm299_vm4, %v715_v33, %v717_v36  ;;  %v326_v39 = vsel %vm325_vm1, %v323_v37, %v320_v34 }
 0x111   :  { %727 = vst.msk [vmem:[#allocation2 + $0x38] sm:$0x33] %vm726_vm12, %v720_v38  ;;  %v613_v40 = vpop.permute.xlu0 %612  ;;  %v719_v41 = vsel %vm299_vm4, %v713_v14, %v718_v6  ;;  %vm230_vm4 = vcmask 1047558  }
 0x112   :  { %333 = vst.msk [vmem:[#allocation2 + $0x10] sm:$0x33] %vm332_vm14, %v326_v39  ;;  %v819_v42 = vpop.permute.xlu1 %818  ;;  %v616_v43 = vrot.slane %v613_v40, 4  ;;  %723 = vst [vmem:[#allocation2 + $0x30] sm:$0x33] %v719_v41 }
 0x113   :  { %v821_v44 = vrot.slane %v819_v42, 4 }
 0x114   :  { %v618_v45 = vsel %vm118_vm10, %v616_v43, %v617_v53 }
 0x115   :  { %v824_v46 = vsel %vm197_vm6, %v819_v42, %v821_v44  ;;  %v619_v15 = vsel %vm404_vm7, %v613_v40, %v618_v45  ;;  %v817_v47 = vpop.permute.xlu0 %816  ;;  %vm231_vm7 = vmor %vm230_vm4, %vm229_vm3 }
 0x116   :  { %830 = vst.msk [vmem:[#allocation2 + $0x38] sm:$0xcc] %vm829_vm8, %v824_v46  ;;  %623 = vst [vmem:[#allocation2 + $0x20] sm:$0xcc] %v619_v15  ;;  %v113_v48 = vpop.permute.xlu1 %112  ;;  %v820_v49 = vrot.slane %v817_v47, 4 }
 0x117   :  { %v115_v50 = vrot.slane %v113_v48, 4 }
 0x118   :  { %v822_v51 = vsel %vm118_vm10, %v820_v49, %v821_v44 }
 0x119   :  { %v119_v52 = vsel %vm118_vm10, %v114_v20, %v115_v50  ;;  %v823_v54 = vsel %vm197_vm6, %v817_v47, %v822_v51  ;;  %v218_v55 = vpop.permute.xlu0 %217  ;;  %vm1612_vm6 = vcmask 7168  }
 0x11a   :  { %v120_v56 = vsel %vm116_vm0, %v119_v52, %v113_v48  ;;  %827 = vst [vmem:[#allocation2 + $0x30] sm:$0xcc] %v823_v54  ;;  %v220_v28 = vpop.permute.xlu1 %219  ;;  %v221_v58 = vrot.slane %v218_v55, 4  ;;  %vm437_vm0 = vmor %vm230_vm4, %vm436_vm13 }
 0x11b   :  { %127 = vst [vmem:[#allocation2 + $0x8] sm:$0x33] %v120_v56  ;;  %v222_v59 = vrot.slane %v220_v28, 4 }
 0x11c   :  { %v224_v60 = vsel %vm223_vm5, %v221_v58, %v218_v55 }
 0x11d   :  { %v225_v61 = vsel %vm118_vm10, %v221_v58, %v222_v59  ;;  %232 = vst.msk [vmem:[#allocation2] sm:$0xcc] %vm231_vm7, %v224_v60  ;;  %v1272_v62 = vld [vmem:[#allocation2 + $0x2c] ss:$16 sps:$4 sm:$0xff]   ;;  %v1274_v63 = vld [vmem:[#allocation2 + $0x28] ss:$16 sps:$4 sm:$0xff]  }
 0x11e   :  { %v226_v1 = vsel %vm223_vm5, %v225_v61, %v220_v28  ;;  %v322_v2 = vpop.permute.xlu1 %321  ;;  %1088 = vmatprep.subr.bf16.mxu1 %v1272_v62  ;;  %vm1613_vm5 = vmmov %vm1612_vm6 }
 0x11f   :  { %233 = vst [vmem:[#allocation2 + $0x8] sm:$0xcc] %v226_v1  ;;  %v324_v3 = vrot.slane %v322_v2, 4  ;;  %v425_v4 = vpop.permute.xlu0 %424  ;;  %1089 = vmatpush1.bf16.msra.mxu1 %v1274_v63 }
 0x120   :  { %v428_v5 = vrot.slane %v425_v4, 4 }
 0x121   :  { %v327_v7 = vsel %vm118_vm10, %v323_v37, %v324_v3  ;;  %v1275_v8 = vld [vmem:[#allocation2 + $0x24] ss:$16 sps:$4 sm:$0xff]   ;;  %v1277_v9 = vld [vmem:[#allocation2 + $0x20] ss:$16 sps:$4 sm:$0xff]  }
 0x122   :  { %v328_v10 = vsel %vm325_vm1, %v327_v7, %v322_v2  ;;  %v431_v11 = vsel %vm1612_vm6, %v428_v5, %v425_v4  ;;  %v427_v0 = vpop.permute.xlu1 %426  ;;  %1035 = vmatprep.subr.bf16.mxu0 %v1275_v8  ;;  %vm1004_vm1 = vcmask 293888  }
 0x123   :  { %334 = vst [vmem:[#allocation2 + $0x18] sm:$0x33] %v328_v10  ;;  %438 = vst.msk [vmem:[#allocation2 + $0x10] sm:$0xcc] %vm437_vm0, %v431_v11  ;;  %v429_v12 = vrot.slane %v427_v0, 4  ;;  %1036 = vmatpush1.bf16.msra.mxu0 %v1277_v9 }
 0x125   :  { %v432_v13 = vsel %vm118_vm10, %v428_v5, %v429_v12 }
 0x126   :  { %v433_v14 = vsel %vm1613_vm5, %v432_v13, %v427_v0 }
 0x127   :  { %439 = vst [vmem:[#allocation2 + $0x18] sm:$0xcc] %v433_v14 }
 0x12a   :  { %v1278_v16 = vld [vmem:[#allocation2 + $0x4] ss:$16 sps:$4 sm:$0xff]   ;;  %v1280_v17 = vld [vmem:[#allocation2] ss:$16 sps:$4 sm:$0xff]  }
 0x12b   :  { %1037 = vmatprep.subr.bf16.mxu0 %v1278_v16 }
 0x12c   :  { %1038 = vmatpush1.bf16.msra.mxu0 %v1280_v17 }
 0x12e   :  { %v1282_v19 = vld [vmem:[#allocation2 + $0xc] ss:$16 sps:$4 sm:$0xff]   ;;  %v1284_v20 = vld [vmem:[#allocation2 + $0x8] ss:$16 sps:$4 sm:$0xff]  }
 0x12f   :  { %1218 = vmatmul.mubr.msk.bf16.vlgmr.msra.gmra.mxu0 %vm1004_vm1, %v1281_v18  ;;  %1090 = vmatprep.subr.bf16.mxu1 %v1282_v19 }
 0x130   :  { %1091 = vmatpush1.bf16.msra.mxu1 %v1284_v20  ;;  %1065 = vmatprep.mubr.bf16.mxu0 %v1295_v57 }
 0x133   :  { %1221 = vmatmul.mubr.msk.bf16.vlgmr.msra.gmra.mxu1 %vm1004_vm1, %v1281_v18 }
 0x134   :  { %1118 = vmatprep.mubr.bf16.mxu1 %v1295_v57 }
 0x137   :  { %1219 = vmatmul.mubr.msk.bf16.gmra.mxu0 %vm1004_vm1, %v1285_v21 }
 0x13b   :  { %1222 = vmatmul.mubr.msk.bf16.gmra.mxu1 %vm1004_vm1, %v1285_v21 }
 0x1ef   :  { %v1057_v22 = vpop.f32.mrf.mxu0 }
 0x1f0   :  { %v1129_v23 = vmax.f32 %v1057_v22, 0.0 }
 0x1f1   :  { %v1059_v24 = vpop.f32.mrf.mxu0 }
 0x1f2   :  { %1145 = vst [vmem:[%s1610_s3] sm:$0xff] %v1129_v23  ;;  %v1130_v25 = vmax.f32 %v1059_v24, 0.0 }
 0x1f3   :  { %v1061_v29 = vpop.f32.mrf.mxu0  ;;  %v1110_v53 = vpop.f32.mrf.mxu1 }
 0x1f4   :  { %1146 = vst [vmem:[%s1610_s3 + $0x8] sm:$0xff] %v1130_v25  ;;  %v1133_v26 = vmax.f32 %v1061_v29, 0.0  ;;  %v1131_v27 = vmax.f32 %v1110_v53, 0.0 }
 0x1f5   :  { %v1063_v30 = vpop.f32.mrf.mxu0  ;;  %v1112_v57 = vpop.f32.mrf.mxu1 }
 0x1f6   :  { %1149 = vst [vmem:[%s1610_s3 + $0x20] sm:$0xff] %v1133_v26  ;;  %1147 = vst [vmem:[%s1610_s3 + $0x10] sm:$0xff] %v1131_v27  ;;  %v1134_v31 = vmax.f32 %v1063_v30, 0.0  ;;  %v1132_v32 = vmax.f32 %v1112_v57, 0.0 }
 0x1f7   :  { %v1067_v33 = vpop.f32.mrf.mxu0  ;;  %v1114_v34 = vpop.f32.mrf.mxu1 }
 0x1f8   :  { %1150 = vst [vmem:[%s1610_s3 + $0x28] sm:$0xff] %v1134_v31  ;;  %1148 = vst [vmem:[%s1610_s3 + $0x18] sm:$0xff] %v1132_v32  ;;  %v1137_v35 = vmax.f32 %v1067_v33, 0.0  ;;  %v1135_v36 = vmax.f32 %v1114_v34, 0.0 }
 0x1f9   :  { %v1069_v37 = vpop.f32.mrf.mxu0  ;;  %v1116_v6 = vpop.f32.mrf.mxu1 }
 0x1fa   :  { %1153 = vst [vmem:[%s1610_s3 + $0x40] sm:$0xff] %v1137_v35  ;;  %1151 = vst [vmem:[%s1610_s3 + $0x30] sm:$0xff] %v1135_v36  ;;  %v1138_v38 = vmax.f32 %v1069_v37, 0.0  ;;  %v1136_v39 = vmax.f32 %v1116_v6, 0.0 }
 0x1fb   :  { %v1071_v40 = vpop.f32.mrf.mxu0  ;;  %v1120_v41 = vpop.f32.mrf.mxu1 }
 0x1fc   :  { %1154 = vst [vmem:[%s1610_s3 + $0x48] sm:$0xff] %v1138_v38  ;;  %1152 = vst [vmem:[%s1610_s3 + $0x38] sm:$0xff] %v1136_v39  ;;  %v1141_v42 = vmax.f32 %v1071_v40, 0.0  ;;  %v1139_v43 = vmax.f32 %v1120_v41, 0.0 }
 0x1fd   :  { %v1073_v44 = vpop.f32.mrf.mxu0  ;;  %v1122_v45 = vpop.f32.mrf.mxu1 }
 0x1fe   :  { %1157 = vst [vmem:[%s1610_s3 + $0x60] sm:$0xff] %v1141_v42  ;;  %1155 = vst [vmem:[%s1610_s3 + $0x50] sm:$0xff] %v1139_v43  ;;  %v1142_v46 = vmax.f32 %v1073_v44, 0.0  ;;  %v1140_v15 = vmax.f32 %v1122_v45, 0.0 }
 0x1ff   :  { %v1124_v47 = vpop.f32.mrf.mxu1 }
 0x200   :  { %1158 = vst [vmem:[%s1610_s3 + $0x68] sm:$0xff] %v1142_v46  ;;  %1156 = vst [vmem:[%s1610_s3 + $0x58] sm:$0xff] %v1140_v15  ;;  %v1143_v48 = vmax.f32 %v1124_v47, 0.0 }
 0x201   :  { %v1126_v49 = vpop.f32.mrf.mxu1 }
 0x202   :  { %1159 = vst [vmem:[%s1610_s3 + $0x70] sm:$0xff] %v1143_v48  ;;  %v1144_v50 = vmax.f32 %v1126_v49, 0.0 }
 0x204   :  { %1160 = vst [vmem:[%s1610_s3 + $0x78] sm:$0xff] %v1144_v50 }

</bundles_post_ra>
